<compile_context>
chip_gen: v6e
topology: v6e:2x2x1
jax: 0.10.0
libtpu: 0.0.40
codegen_flags: <defaults>
</compile_context>

<pallas_src>
import functools
import math

import jax
import jax.numpy as jnp
from jax import lax
from jax.experimental import pallas as pl
from jax.experimental.pallas import tpu as pltpu

_LANE = 128        # lane width / accumulator width
_ROW_CAP = 32      # max tb*SUB rows per block (keeps per-chunk values in vregs)
_MAX_CHUNKS = 128  # max 128-lane chunks per grid step (bounds unroll + block size)


def _pick_sub(n):
    """Largest sub-row count in {32,16,8,4,2,1} dividing n (no padding).

    32 rows >= the vreg sublane packing of every dtype (8 f32 / 16 bf16 /
    32 int8), so blocks are fully sublane-packed whenever n allows it.
    """
    for cand in (32, 16, 8, 4, 2):
        if n % cand == 0:
            return cand
    return 1


def _largest_divisor_leq(x, cap):
    cap = max(1, min(cap, x))
    for d in range(cap, 0, -1):
        if x % d == 0:
            return d
    return 1


def _nss_kernel(p_ref, t_ref, out_ref,
                sp_ref, sp2_ref, st_ref, spt_ref,
                *, n_elems, m_valid, tile, chunk_w, n_chunks, ragged):
    """Streaming per-sample NSS reduction with lane-wide f32 accumulators.

    p_ref / t_ref : (tb, SUB, tile) blocks of the (B, SUB, M) inputs.
    out_ref       : (tb, 1, 1) per-sample loss (written at the last M tile).
    s*_ref        : (tb, SUB, chunk_w) f32 running partials.
    """
    k = pl.program_id(1)

    @pl.when(k == 0)
    def _init():
        sp_ref[...] = jnp.zeros_like(sp_ref)
        sp2_ref[...] = jnp.zeros_like(sp2_ref)
        st_ref[...] = jnp.zeros_like(st_ref)
        spt_ref[...] = jnp.zeros_like(spt_ref)

    acc_shape = sp_ref.shape  # (tb, SUB, chunk_w)
    sp = jnp.zeros(acc_shape, jnp.float32)
    sp2 = jnp.zeros(acc_shape, jnp.float32)
    st = jnp.zeros(acc_shape, jnp.float32)
    spt = jnp.zeros(acc_shape, jnp.float32)

    if ragged:
        lane_iota = lax.broadcasted_iota(jnp.int32, acc_shape, 2)
        limit = m_valid - k * tile  # valid lanes remaining in this tile

    # Static, 128-lane-aligned chunk walk over the tile: pure VALU adds, no
    # cross-lane XLU work, no block-sized intermediates.
    for c in range(n_chunks):
        sl = pl.ds(c * chunk_w, chunk_w)
        pc = p_ref[:, :, sl].astype(jnp.float32)
        tc = t_ref[:, :, sl].astype(jnp.float32)
        if ragged:
            valid = lane_iota < (limit - c * chunk_w)
            pc = jnp.where(valid, pc, 0.0)
            tc = jnp.where(valid, tc, 0.0)
        sp = sp + pc
        sp2 = sp2 + pc * pc
        st = st + tc
        spt = spt + pc * tc

    sp_ref[...] += sp
    sp2_ref[...] += sp2
    st_ref[...] += st
    spt_ref[...] += spt

    @pl.when(k == pl.num_programs(1) - 1)
    def _finalize():
        def total(r):  # (tb, SUB, chunk_w) -> (tb, 1, 1)
            s = jnp.sum(r[...], axis=2, keepdims=True)
            return jnp.sum(s, axis=1, keepdims=True)

        sp_s = total(sp_ref)
        sp2_s = total(sp2_ref)
        st_s = total(st_ref)
        spt_s = total(spt_ref)

        n_f = jnp.float32(n_elems)
        mean = sp_s / n_f
        # Unbiased (N-1) variance, single-pass form, f32 accumulation; clamp
        # at 0 to guard rare cancellation.  n_elems == 1 gives 0/0 = NaN,
        # matching torch.std(ddof=1) on a single element.
        var = jnp.maximum(sp2_s - n_f * mean * mean, 0.0) / jnp.float32(n_elems - 1)
        std = jnp.sqrt(var)
        # sum(((p - mean)/(std+eps)) * t) == (sum(p*t) - mean*sum(t))/(std+eps)
        num = (spt_s - mean * st_s) / (std + jnp.float32(1e-7))
        # NOTE: sum(t) == 0 for a sample yields Inf/NaN, matching the PyTorch
        # module's behavior.
        out_ref[...] = -(num / st_s)


def nss_loss(y_pred, y_true, size_average=True, tile_n=16384, batch_tile=8):
    """Pallas implementation of NSSLoss.forward (returns a scalar)."""
    assert y_pred.shape == y_true.shape
    b = int(y_pred.shape[0])
    n = int(math.prod(y_pred.shape[1:])) if y_pred.ndim > 1 else 1
    itemsize = jnp.dtype(y_pred.dtype).itemsize

    # --- layout: (B, N) -> (B, SUB, M), zero-copy, no padding -------------
    sub = _pick_sub(n)
    m = n // sub

    # Batch tile: a divisor of B (no padded rows), small enough that rows per
    # block stay modest, capped at ceil(B/2) so the 'parallel' batch axis has
    # >= 2 tiles and both TensorCores get work on v7x.
    tb_cap = max(1, _ROW_CAP // sub)
    tb_cap = min(tb_cap, batch_tile)
    if b >= 2:
        tb_cap = min(tb_cap, -(-b // 2))
    tb = _largest_divisor_leq(b, tb_cap)
    b_tiles = b // tb

    # Lane tile along the reduction axis: a multiple of 128 (or the full M if
    # M <= 128).  The last tile may be ragged; it is masked in the kernel.
    if m <= _LANE:
        tile, chunk_w, n_chunks = m, m, 1
    else:
        tile = min(tile_n, _MAX_CHUNKS * _LANE, (m // _LANE) * _LANE)
        tile = max(_LANE, (tile // _LANE) * _LANE)
        chunk_w = _LANE
        n_chunks = tile // _LANE
    m_tiles = -(-m // tile)
    ragged = (m_tiles * tile != m)

    p = jnp.reshape(y_pred, (b, sub, m))
    t = jnp.reshape(y_true, (b, sub, m))

    kernel = functools.partial(
        _nss_kernel, n_elems=n, m_valid=m, tile=tile,
        chunk_w=chunk_w, n_chunks=n_chunks, ragged=ragged)

    in_spec = pl.BlockSpec((tb, sub, tile), lambda i, k: (i, 0, k))

    cost = pl.CostEstimate(
        flops=8 * b * n,
        transcendentals=0,
        bytes_accessed=2 * b * n * itemsize + 4 * b,
    )

    out = pl.pallas_call(
        kernel,
        out_shape=jax.ShapeDtypeStruct((b, 1, 1), jnp.float32),
        grid_spec=pltpu.PrefetchScalarGridSpec(
            num_scalar_prefetch=0,
            grid=(b_tiles, m_tiles),
            in_specs=[in_spec, in_spec],
            out_specs=pl.BlockSpec((tb, 1, 1), lambda i, k: (i, 0, 0)),
            scratch_shapes=[pltpu.VMEM((tb, sub, chunk_w), jnp.float32)] * 4,
        ),
        compiler_params=pltpu.CompilerParams(
            dimension_semantics=("parallel", "arbitrary"),
            vmem_limit_bytes=32 * 1024 * 1024,
        ),
        cost_estimate=cost,
    )(p, t)

    loss = out.reshape(b)
    return jnp.mean(loss) if size_average else jnp.sum(loss)


def _nss_loss_ref(y_pred, y_true, size_average=True):
    """Plain-JAX reference mirroring the PyTorch module."""
    b = y_pred.shape[0]
    p = jnp.reshape(y_pred, (b, -1)).astype(jnp.float32)
    t = jnp.reshape(y_true, (b, -1)).astype(jnp.float32)
    mean = jnp.mean(p, axis=-1, keepdims=True)
    std = jnp.std(p, axis=-1, keepdims=True, ddof=1)  # unbiased, like torch.std
    pn = (p - mean) / (std + 1e-7)
    loss = -(jnp.sum(pn * t, axis=-1, keepdims=True)
             / jnp.sum(t, axis=-1, keepdims=True))
    return jnp.mean(loss) if size_average else jnp.sum(loss)


if __name__ == "__main__":
    key = jax.random.PRNGKey(0)
    k1, k2, k3, k4 = jax.random.split(key, 4)

    # Small shapes consistent with a saliency-map loss: (B, C, H, W).
    y_pred = jax.random.normal(k1, (2, 4, 16, 16), dtype=jnp.float32)
    # Fixation-style 0/1 target (avoids a zero denominator).
    y_true = (jax.random.uniform(k2, (2, 4, 16, 16)) > 0.9).astype(jnp.float32)

    out_mean = jax.block_until_ready(nss_loss(y_pred, y_true, size_average=True))
    out_sum = jax.block_until_ready(nss_loss(y_pred, y_true, size_average=False))
    ref_mean = _nss_loss_ref(y_pred, y_true, size_average=True)
    ref_sum = _nss_loss_ref(y_pred, y_true, size_average=False)
    assert jnp.allclose(out_mean, ref_mean, atol=1e-4, rtol=1e-4), (out_mean, ref_mean)
    assert jnp.allclose(out_sum, ref_sum, atol=1e-4, rtol=1e-4), (out_sum, ref_sum)

    # Unaligned N (765 elements/sample): exercises sub fallback + in-kernel
    # ragged-tail masking with zero wrapper-side padding.
    y_pred2 = jax.random.normal(k3, (3, 3, 15, 17), dtype=jnp.float32)
    y_true2 = (jax.random.uniform(k4, (3, 3, 15, 17)) > 0.85).astype(jnp.float32)
    out2 = jax.block_until_ready(nss_loss(y_pred2, y_true2))
    ref2 = _nss_loss_ref(y_pred2, y_true2)
    assert jnp.allclose(out2, ref2, atol=1e-4, rtol=1e-4), (out2, ref2)

    # bf16 inputs: exercises the in-kernel cast path (inputs stream in native
    # dtype; accumulation stays f32).
    yp_b, yt_b = y_pred.astype(jnp.bfloat16), y_true.astype(jnp.bfloat16)
    out3 = jax.block_until_ready(nss_loss(yp_b, yt_b))
    ref3 = _nss_loss_ref(yp_b, yt_b)
    assert jnp.allclose(out3, ref3, atol=5e-3, rtol=5e-3), (out3, ref3)

    print("KERNEL_OK")
</pallas_src>

<mosaic_0001>
module attributes {stable_mosaic.version = 11 : i64} {
  func.func @_nss_kernel(%arg0: i32, %arg1: i32, %arg2: memref<1x32x32xf32, #tpu.memory_space<vmem>>, %arg3: memref<1x32x32xf32, #tpu.memory_space<vmem>>, %arg4: memref<1x1x1xf32, #tpu.memory_space<vmem>>, %arg5: memref<1x32x32xf32, #tpu.memory_space<vmem>>, %arg6: memref<1x32x32xf32, #tpu.memory_space<vmem>>, %arg7: memref<1x32x32xf32, #tpu.memory_space<vmem>>, %arg8: memref<1x32x32xf32, #tpu.memory_space<vmem>>) attributes {dimension_semantics = [#tpu.dimension_semantics<parallel>, #tpu.dimension_semantics<arbitrary>], iteration_bounds = array<i64: 2, 1>, scalar_prefetch = 0 : i64, scratch_operands = 4 : i64, tpu.core_type = #tpu.core_type<tc>, window_params = [{transform_indices = @transform_0, window_bounds = array<i64: 1, 32, 32>}, {transform_indices = @transform_1, window_bounds = array<i64: 1, 32, 32>}, {transform_indices = @transform_2, window_bounds = array<i64: 1, 1, 1>}]} {
    %c0_i32 = arith.constant 0 : i32
    %0 = arith.cmpi eq, %arg1, %c0_i32 : i32
    %1 = arith.extui %0 : i1 to i32
    %c0_i32_0 = arith.constant 0 : i32
    %2 = arith.cmpi ne, %1, %c0_i32_0 : i32
    scf.if %2 {
      %cst_35 = arith.constant 0.000000e+00 : f32
      %30 = vector.broadcast %cst_35 : f32 to vector<1x32x32xf32>
      %c0_36 = arith.constant 0 : index
      %c0_37 = arith.constant 0 : index
      %c0_38 = arith.constant 0 : index
      %31 = vector.load %arg5[%c0_36, %c0_37, %c0_38] : memref<1x32x32xf32, #tpu.memory_space<vmem>>, vector<1x32x32xf32>
      tpu.vector_store %arg5[%c0_36, %c0_37, %c0_38], %30 {strides = array<i32>} : memref<1x32x32xf32, #tpu.memory_space<vmem>>, vector<1x32x32xf32>,
      %cst_39 = arith.constant 0.000000e+00 : f32
      %32 = vector.broadcast %cst_39 : f32 to vector<1x32x32xf32>
      %c0_40 = arith.constant 0 : index
      %c0_41 = arith.constant 0 : index
      %c0_42 = arith.constant 0 : index
      %33 = vector.load %arg6[%c0_40, %c0_41, %c0_42] : memref<1x32x32xf32, #tpu.memory_space<vmem>>, vector<1x32x32xf32>
      tpu.vector_store %arg6[%c0_40, %c0_41, %c0_42], %32 {strides = array<i32>} : memref<1x32x32xf32, #tpu.memory_space<vmem>>, vector<1x32x32xf32>,
      %cst_43 = arith.constant 0.000000e+00 : f32
      %34 = vector.broadcast %cst_43 : f32 to vector<1x32x32xf32>
      %c0_44 = arith.constant 0 : index
      %c0_45 = arith.constant 0 : index
      %c0_46 = arith.constant 0 : index
      %35 = vector.load %arg7[%c0_44, %c0_45, %c0_46] : memref<1x32x32xf32, #tpu.memory_space<vmem>>, vector<1x32x32xf32>
      tpu.vector_store %arg7[%c0_44, %c0_45, %c0_46], %34 {strides = array<i32>} : memref<1x32x32xf32, #tpu.memory_space<vmem>>, vector<1x32x32xf32>,
      %cst_47 = arith.constant 0.000000e+00 : f32
      %36 = vector.broadcast %cst_47 : f32 to vector<1x32x32xf32>
      %c0_48 = arith.constant 0 : index
      %c0_49 = arith.constant 0 : index
      %c0_50 = arith.constant 0 : index
      %37 = vector.load %arg8[%c0_48, %c0_49, %c0_50] : memref<1x32x32xf32, #tpu.memory_space<vmem>>, vector<1x32x32xf32>
      tpu.vector_store %arg8[%c0_48, %c0_49, %c0_50], %36 {strides = array<i32>} : memref<1x32x32xf32, #tpu.memory_space<vmem>>, vector<1x32x32xf32>,
    } else {
    }
    %cst = arith.constant 0.000000e+00 : f32
    %3 = vector.broadcast %cst : f32 to vector<1x32x32xf32>
    %cst_1 = arith.constant 0.000000e+00 : f32
    %4 = vector.broadcast %cst_1 : f32 to vector<1x32x32xf32>
    %cst_2 = arith.constant 0.000000e+00 : f32
    %5 = vector.broadcast %cst_2 : f32 to vector<1x32x32xf32>
    %cst_3 = arith.constant 0.000000e+00 : f32
    %6 = vector.broadcast %cst_3 : f32 to vector<1x32x32xf32>
    %c0 = arith.constant 0 : index
    %c0_4 = arith.constant 0 : index
    %c0_5 = arith.constant 0 : index
    %7 = vector.load %arg2[%c0, %c0_4, %c0_5] : memref<1x32x32xf32, #tpu.memory_space<vmem>>, vector<1x32x32xf32>
    %c0_6 = arith.constant 0 : index
    %c0_7 = arith.constant 0 : index
    %c0_8 = arith.constant 0 : index
    %8 = vector.load %arg3[%c0_6, %c0_7, %c0_8] : memref<1x32x32xf32, #tpu.memory_space<vmem>>, vector<1x32x32xf32>
    %9 = arith.addf %3, %7 : vector<1x32x32xf32>
    %10 = arith.mulf %7, %7 : vector<1x32x32xf32>
    %11 = arith.addf %4, %10 : vector<1x32x32xf32>
    %12 = arith.addf %5, %8 : vector<1x32x32xf32>
    %13 = arith.mulf %7, %8 : vector<1x32x32xf32>
    %14 = arith.addf %6, %13 : vector<1x32x32xf32>
    %c0_9 = arith.constant 0 : index
    %c0_10 = arith.constant 0 : index
    %c0_11 = arith.constant 0 : index
    %15 = vector.load %arg5[%c0_9, %c0_10, %c0_11] : memref<1x32x32xf32, #tpu.memory_space<vmem>>, vector<1x32x32xf32>
    %16 = arith.addf %15, %9 : vector<1x32x32xf32>
    %c0_12 = arith.constant 0 : index
    %c0_13 = arith.constant 0 : index
    %c0_14 = arith.constant 0 : index
    %17 = vector.load %arg5[%c0_12, %c0_13, %c0_14] : memref<1x32x32xf32, #tpu.memory_space<vmem>>, vector<1x32x32xf32>
    tpu.vector_store %arg5[%c0_12, %c0_13, %c0_14], %16 {strides = array<i32>} : memref<1x32x32xf32, #tpu.memory_space<vmem>>, vector<1x32x32xf32>,
    %c0_15 = arith.constant 0 : index
    %c0_16 = arith.constant 0 : index
    %c0_17 = arith.constant 0 : index
    %18 = vector.load %arg6[%c0_15, %c0_16, %c0_17] : memref<1x32x32xf32, #tpu.memory_space<vmem>>, vector<1x32x32xf32>
    %19 = arith.addf %18, %11 : vector<1x32x32xf32>
    %c0_18 = arith.constant 0 : index
    %c0_19 = arith.constant 0 : index
    %c0_20 = arith.constant 0 : index
    %20 = vector.load %arg6[%c0_18, %c0_19, %c0_20] : memref<1x32x32xf32, #tpu.memory_space<vmem>>, vector<1x32x32xf32>
    tpu.vector_store %arg6[%c0_18, %c0_19, %c0_20], %19 {strides = array<i32>} : memref<1x32x32xf32, #tpu.memory_space<vmem>>, vector<1x32x32xf32>,
    %c0_21 = arith.constant 0 : index
    %c0_22 = arith.constant 0 : index
    %c0_23 = arith.constant 0 : index
    %21 = vector.load %arg7[%c0_21, %c0_22, %c0_23] : memref<1x32x32xf32, #tpu.memory_space<vmem>>, vector<1x32x32xf32>
    %22 = arith.addf %21, %12 : vector<1x32x32xf32>
    %c0_24 = arith.constant 0 : index
    %c0_25 = arith.constant 0 : index
    %c0_26 = arith.constant 0 : index
    %23 = vector.load %arg7[%c0_24, %c0_25, %c0_26] : memref<1x32x32xf32, #tpu.memory_space<vmem>>, vector<1x32x32xf32>
    tpu.vector_store %arg7[%c0_24, %c0_25, %c0_26], %22 {strides = array<i32>} : memref<1x32x32xf32, #tpu.memory_space<vmem>>, vector<1x32x32xf32>,
    %c0_27 = arith.constant 0 : index
    %c0_28 = arith.constant 0 : index
    %c0_29 = arith.constant 0 : index
    %24 = vector.load %arg8[%c0_27, %c0_28, %c0_29] : memref<1x32x32xf32, #tpu.memory_space<vmem>>, vector<1x32x32xf32>
    %25 = arith.addf %24, %14 : vector<1x32x32xf32>
    %c0_30 = arith.constant 0 : index
    %c0_31 = arith.constant 0 : index
    %c0_32 = arith.constant 0 : index
    %26 = vector.load %arg8[%c0_30, %c0_31, %c0_32] : memref<1x32x32xf32, #tpu.memory_space<vmem>>, vector<1x32x32xf32>
    tpu.vector_store %arg8[%c0_30, %c0_31, %c0_32], %25 {strides = array<i32>} : memref<1x32x32xf32, #tpu.memory_space<vmem>>, vector<1x32x32xf32>,
    %c0_i32_33 = arith.constant 0 : i32
    %27 = arith.cmpi eq, %arg1, %c0_i32_33 : i32
    %28 = arith.extui %27 : i1 to i32
    %c0_i32_34 = arith.constant 0 : i32
    %29 = arith.cmpi ne, %28, %c0_i32_34 : i32
    scf.if %29 {
      %c0_35 = arith.constant 0 : index
      %c0_36 = arith.constant 0 : index
      %c0_37 = arith.constant 0 : index
      %30 = vector.load %arg5[%c0_35, %c0_36, %c0_37] : memref<1x32x32xf32, #tpu.memory_space<vmem>>, vector<1x32x32xf32>
      %cst_38 = arith.constant dense<0.000000e+00> : vector<1x32xf32>
      %31 = vector.multi_reduction <add>, %30, %cst_38 [2] : vector<1x32x32xf32> to vector<1x32xf32>
      %32 = vector.shape_cast %31 : vector<1x32xf32> to vector<1x32x1xf32>
      %cst_39 = arith.constant dense<0.000000e+00> : vector<1x1xf32>
      %33 = vector.multi_reduction <add>, %32, %cst_39 [1] : vector<1x32x1xf32> to vector<1x1xf32>
      %34 = vector.shape_cast %33 : vector<1x1xf32> to vector<1x1x1xf32>
      %c0_40 = arith.constant 0 : index
      %c0_41 = arith.constant 0 : index
      %c0_42 = arith.constant 0 : index
      %35 = vector.load %arg6[%c0_40, %c0_41, %c0_42] : memref<1x32x32xf32, #tpu.memory_space<vmem>>, vector<1x32x32xf32>
      %cst_43 = arith.constant dense<0.000000e+00> : vector<1x32xf32>
      %36 = vector.multi_reduction <add>, %35, %cst_43 [2] : vector<1x32x32xf32> to vector<1x32xf32>
      %37 = vector.shape_cast %36 : vector<1x32xf32> to vector<1x32x1xf32>
      %cst_44 = arith.constant dense<0.000000e+00> : vector<1x1xf32>
      %38 = vector.multi_reduction <add>, %37, %cst_44 [1] : vector<1x32x1xf32> to vector<1x1xf32>
      %39 = vector.shape_cast %38 : vector<1x1xf32> to vector<1x1x1xf32>
      %c0_45 = arith.constant 0 : index
      %c0_46 = arith.constant 0 : index
      %c0_47 = arith.constant 0 : index
      %40 = vector.load %arg7[%c0_45, %c0_46, %c0_47] : memref<1x32x32xf32, #tpu.memory_space<vmem>>, vector<1x32x32xf32>
      %cst_48 = arith.constant dense<0.000000e+00> : vector<1x32xf32>
      %41 = vector.multi_reduction <add>, %40, %cst_48 [2] : vector<1x32x32xf32> to vector<1x32xf32>
      %42 = vector.shape_cast %41 : vector<1x32xf32> to vector<1x32x1xf32>
      %cst_49 = arith.constant dense<0.000000e+00> : vector<1x1xf32>
      %43 = vector.multi_reduction <add>, %42, %cst_49 [1] : vector<1x32x1xf32> to vector<1x1xf32>
      %44 = vector.shape_cast %43 : vector<1x1xf32> to vector<1x1x1xf32>
      %c0_50 = arith.constant 0 : index
      %c0_51 = arith.constant 0 : index
      %c0_52 = arith.constant 0 : index
      %45 = vector.load %arg8[%c0_50, %c0_51, %c0_52] : memref<1x32x32xf32, #tpu.memory_space<vmem>>, vector<1x32x32xf32>
      %cst_53 = arith.constant dense<0.000000e+00> : vector<1x32xf32>
      %46 = vector.multi_reduction <add>, %45, %cst_53 [2] : vector<1x32x32xf32> to vector<1x32xf32>
      %47 = vector.shape_cast %46 : vector<1x32xf32> to vector<1x32x1xf32>
      %cst_54 = arith.constant dense<0.000000e+00> : vector<1x1xf32>
      %48 = vector.multi_reduction <add>, %47, %cst_54 [1] : vector<1x32x1xf32> to vector<1x1xf32>
      %49 = vector.shape_cast %48 : vector<1x1xf32> to vector<1x1x1xf32>
      %cst_55 = arith.constant 1.024000e+03 : f32
      %50 = vector.broadcast %cst_55 : f32 to vector<1x1x1xf32>
      %51 = arith.divf %34, %50 : vector<1x1x1xf32>
      %cst_56 = arith.constant 1.024000e+03 : f32
      %52 = vector.broadcast %cst_56 : f32 to vector<1x1x1xf32>
      %53 = arith.mulf %52, %51 : vector<1x1x1xf32>
      %54 = arith.mulf %53, %51 : vector<1x1x1xf32>
      %55 = arith.subf %39, %54 : vector<1x1x1xf32>
      %cst_57 = arith.constant 0.000000e+00 : f32
      %56 = vector.broadcast %cst_57 : f32 to vector<1x1x1xf32>
      %57 = arith.maximumf %55, %56 : vector<1x1x1xf32>
      %cst_58 = arith.constant 1.023000e+03 : f32
      %58 = vector.broadcast %cst_58 : f32 to vector<1x1x1xf32>
      %59 = arith.divf %57, %58 : vector<1x1x1xf32>
      %60 = math.sqrt %59 : vector<1x1x1xf32>
      %61 = arith.mulf %51, %44 : vector<1x1x1xf32>
      %62 = arith.subf %49, %61 : vector<1x1x1xf32>
      %cst_59 = arith.constant 1.000000e-07 : f32
      %63 = vector.broadcast %cst_59 : f32 to vector<1x1x1xf32>
      %64 = arith.addf %60, %63 : vector<1x1x1xf32>
      %65 = arith.divf %62, %64 : vector<1x1x1xf32>
      %66 = arith.divf %65, %44 : vector<1x1x1xf32>
      %cst_60 = arith.constant 0.000000e+00 : f32
      %67 = vector.broadcast %cst_60 : f32 to vector<1x1x1xf32>
      %68 = arith.subf %67, %66 : vector<1x1x1xf32>
      %c0_61 = arith.constant 0 : index
      %c0_62 = arith.constant 0 : index
      %c0_63 = arith.constant 0 : index
      %69 = vector.load %arg4[%c0_61, %c0_62, %c0_63] : memref<1x1x1xf32, #tpu.memory_space<vmem>>, vector<1x1x1xf32>
      tpu.vector_store %arg4[%c0_61, %c0_62, %c0_63], %68 {strides = array<i32>} : memref<1x1x1xf32, #tpu.memory_space<vmem>>, vector<1x1x1xf32>,
    } else {
    }
    return
  }
  func.func @transform_0(%arg0: i32, %arg1: i32) -> (i32, i32, i32) {
    %c0_i32 = arith.constant 0 : i32
    %c0_i32_0 = arith.constant 0 : i32
    return %arg0, %c0_i32, %arg1 : i32, i32, i32
  }
  func.func @transform_1(%arg0: i32, %arg1: i32) -> (i32, i32, i32) {
    %c0_i32 = arith.constant 0 : i32
    %c0_i32_0 = arith.constant 0 : i32
    return %arg0, %c0_i32, %arg1 : i32, i32, i32
  }
  func.func @transform_2(%arg0: i32, %arg1: i32) -> (i32, i32, i32) {
    %c0_i32 = arith.constant 0 : i32
    %c0_i32_0 = arith.constant 0 : i32
    %c0_i32_1 = arith.constant 0 : i32
    return %arg0, %c0_i32, %c0_i32_0 : i32, i32, i32
  }
}

</mosaic_0001>

<bundles_post_ra>
// kernel: tpu_custom_call.1
= control target key start
LH: loop header
LB: loop body
LE: loop exit
PB: predicated region body
PF: predicated region fallthrough
CT: control target
= control target key end

     0   :  { %7 = vsyncpa [#allocation7], 0  ;;  %s946_s0 = inlined_call_operand.hbm [shape: f32[2,32,32], index: 0, kind: input, shape index: {}]   ;;  %s947_s1 = inlined_call_operand.hbm [shape: f32[2,32,32], index: 1, kind: input, shape index: {}]   ;;  %s948_s2 = inlined_call_operand.vmem [shape: f32[2,1,1], index: 2, kind: output, shape index: {}]  }
   0x1   :  { %9 = vsyncpa [#allocation7 + $0x1], 0 }
   0x2   :  { %10 = vsyncpa [#allocation9], 0 }
   0x3   :  { %12 = vsyncpa [#allocation9 + $0x1], 0  ;;  %s760_s9 = smov 0   ;;  %s762_s10 = smov 0  }
   0x4   :  { %s764_s11 = smov 0   ;;  %s766_s12 = smov 0  }
   0x5   :  { %s768_s13 = smov 0   ;;  %s770_s14 = smov 0  }
   0x6 LB: > { %s542_s15 = sadd.s32 4294967295, %s738_s14   ;;  %s30_s16 = sadd.s32 1, %s734_s13  ;;  %s738_s14 = sphi %s770_s14, %s18_s14   ;;  %s734_s13 = sphi %s768_s13, %s957_s13   ;;  %s730_s12 = sphi %s766_s12, %s956_s12   ;;  %s726_s11 = sphi %s764_s11, %s955_s11   ;;  %s722_s10 = sphi %s762_s10, %s954_s10   ;;  %s718_s9 = sphi %s760_s9, %s953_s9  }
   0x7   : > { %p32_p0 = scmp.ge.s32.totalorder %s30_s16, 2  ;;  %s39_s17 = sadd.s32 1, %s726_s11 }
   0x8   : > { %p46_p1 = scmp.ne.s32.totalorder %s726_s11, %s722_s10  ;;  %p47_p2 = scmp.eq.s32.totalorder %s738_s14, 0 }
   0x9   : > { %s959_s16 = smov (%p32_p0, %s30_s16), 0  ;;  %p52_p4 = scmp.ne.s32.totalorder %s722_s10, %s718_s9 }
   0xa   : > { %p796_p3 = por %p47_p2, %p46_p1  ;;  %s34_s19 = ssub.s32 %s734_s13, %s959_s16 }
   0xb   : > { %p53_p5 = scmp.eq.s32.totalorder %s542_s15, 0  ;;  %p37_p6 = scmp.eq.s32.totalorder %s34_s19, 0 }
   0xc   : > { %p570_p8 = scmp.lt.s32.totalorder %s738_s14, 2  ;;  %s812_s22 = sand.u32 1, %s726_s11  }
   0xd   : > { %p803_p7 = por %p53_p5, %p52_p4  ;;  %s557_s23 = sshll.u32 %s734_s13, 9 }
   0xe   : > { %s809_s21 = scalar_select %p37_p6, %s726_s11, %s39_s17  }
   0xf   : > { %s546_s24 = sshll.u32 %s812_s22, 5  ;;  %s141_s27 = scalar_lea.hbm %s946_s0, %s557_s23 }
  0x10   : > { %s134_s28 = scalar_lea.vmem [#allocation6], %s546_s24  ;;  %p823_p9 = pnand %p570_p8, %p796_p3 }
  0x11   : > { %s142_s29 = sshll.u32 %s134_s28, 4  ;;  %s131_s3 = scalar_lea.sflag [#allocation7], %s812_s22  ;;  %s143_s29 = int_to_ptr.vmem [resolvable:$true] %s142_s29 }
  0x12   : > { %p630_p10 = pneg %p823_p9  ;;  %s641_s4 = scalar_lea.vmem %s143_s29, 512 }
  0x13   : > { %p642_p11 = scmp.ne.s32.totalorder %s143_s29, %s641_s4  ;;  %s740_s5 = smov [#allocation6]  }
  0x14   : > { %s646_s6 = sshll.u32 %s740_s5, 4  ;;  %s647_s6 = int_to_ptr.vmem [resolvable:$false] %s646_s6 }
  0x15   : > { %p644_p12 = pnand %p642_p11, %p630_p10  ;;  %s648_s7 = scalar_lea.vmem %s647_s6, 1024 }
  0x16   : > { %p649_p0 = scmp.lt.s32.totalorder %s143_s29, %s647_s6  ;;  %p650_p1 = scmp.lt.s32.totalorder %s648_s7, %s641_s4 }
  0x17   : > { %p645_p13 = pneg %p644_p12 }
  0x18   : > { %p651_p2 = por %p650_p1, %p649_p0 }
  0x1a   : > { %p652_p3 = pnand %p651_p2, %p645_p13 }
  0x1c   : > { %655 = shalt.err (!%p652_p3)
}
  0x1d   : > { %s741_s8 = smov 128   ;;  %s742_s9 = smov 8  }
  0x1e   : > { %566 = dma.hbm_to_vmem [thread:$0]  (!%p823_p9), %s141_s27, 512, %s143_s29, %s131_s3, %s741_s8, %s741_s8, %s742_s9  }
  0x1f   : > { %p552_p4 = scmp.ge.s32.totalorder %s738_s14, 1  ;;  %p172_p5 = scmp.lt.s32.totalorder %s738_s14, 3 }
  0x20   : > { %s163_s19 = scalar_lea.hbm %s947_s1, %s557_s23  ;;  %s156_s25 = scalar_lea.vmem [#allocation8], %s546_s24 }
  0x21   : > { %p837_p6 = pnand %p552_p4, %p172_p5  ;;  %s164_s26 = sshll.u32 %s156_s25, 4  ;;  %s165_s26 = int_to_ptr.vmem [resolvable:$true] %s164_s26 }
  0x22   : > { %s153_s28 = scalar_lea.sflag [#allocation9], %s812_s22  ;;  %s669_s4 = scalar_lea.vmem %s165_s26, 512 }
  0x23   : > { %p670_p8 = scmp.ne.s32.totalorder %s165_s26, %s669_s4  ;;  %s743_s27 = smov [#allocation8]  }
  0x24   : > { %s674_s29 = sshll.u32 %s743_s27, 4  ;;  %s675_s29 = int_to_ptr.vmem [resolvable:$false] %s674_s29 }
  0x25   : > { %p672_p11 = pnand %p670_p8, %p630_p10  ;;  %s676_s3 = scalar_lea.vmem %s675_s29, 1024 }
  0x26   : > { %p677_p13 = scmp.lt.s32.totalorder %s165_s26, %s675_s29  ;;  %p678_p0 = scmp.lt.s32.totalorder %s676_s3, %s669_s4 }
  0x27   : > { %p673_p12 = pneg %p672_p11 }
  0x28   : > { %p679_p1 = por %p678_p0, %p677_p13 }
  0x2a   : > { %p680_p2 = pnand %p679_p1, %p673_p12 }
  0x2c   : > { %683 = shalt.err (!%p680_p2)
}
  0x2d   : > { %569 = dma.hbm_to_vmem [thread:$0]  (!%p823_p9), %s163_s19, 512, %s165_s26, %s153_s28, %s741_s8, %s741_s8, %s742_s9  }
  0x2e   : > { %176 = sbr.rel (%p837_p6) target bundleno = 287 (0x11f), region = 28  ;;  %s178_s22 = sand.u32 (!%p837_p6), 1, %s722_s10  }
  0x2f   : > { %s553_s23 = sshll.u32 (!%p837_p6), %s178_s22, 5  ;;  %s179_s24 = scalar_lea.sflag (!%p837_p6), [#allocation7], %s178_s22 }
  0x30   : > { %s855_s5 = scalar_lea.vmem (!%p837_p6), [#allocation6], %s553_s23 }
  0x33   : > { %709 = dma.done.wait (%p803_p7), %s179_s24, 512  }
  0x34   : > { %711 = vsyncadd (%p803_p7), %s179_s24, 4294966784  ;;  %s188_s6 = scalar_lea.sflag [#allocation9], %s178_s22  ;;  %s861_s7 = scalar_lea.vmem [#allocation8], %s553_s23 }
  0x35   : > { %713 = dma.done.wait (%p803_p7), %s188_s6, 512  }
  0x36   : > { %715 = vsyncadd (%p803_p7), %s188_s6, 4294966784  ;;  %vm222_vm0 = vcmask 261120   ;;  %v744_v0 = vmov 0.0   ;;  %v241_v1 = vld [vmem:[%s855_s5 + $0x10] sm:$0xff]  ;;  %v239_v2 = vld [vmem:[%s855_s5] sm:$0xff]  ;;  %p215_p7 = scmp.lt.s32.totalorder %s730_s12, 1 }
  0x37   : > { %225 = vst.msk [vmem:[#allocation2 + $0x10] sm:$0xff] %vm222_vm0, %v744_v0  ;;  %223 = vst.msk [vmem:[#allocation2] sm:$0xff] %vm222_vm0, %v744_v0  ;;  %v242_v3 = vld [vmem:[%s855_s5 + $0x18] sm:$0xff]  ;;  %v251_v7 = vmul.f32 %v239_v2, %v239_v2  ;;  %v253_v8 = vmul.f32 %v241_v1, %v241_v1  ;;  %v240_v13 = vld [vmem:[%s855_s5 + $0x8] sm:$0xff]  ;;  %vm446_vm3 = vcmask 0  }
  0x38   : > { %224 = vst.msk [vmem:[#allocation2 + $0x8] sm:$0xff] %vm222_vm0, %v744_v0  ;;  %226 = vst.msk [vmem:[#allocation2 + $0x18] sm:$0xff] %vm222_vm0, %v744_v0  ;;  %v254_v9 = vmul.f32 %v242_v3, %v242_v3  ;;  %v252_v17 = vmul.f32 %v240_v13, %v240_v13  ;;  %v243_v24 = vld [vmem:[%s861_s7] sm:$0xff]  ;;  %v244_v26 = vld [vmem:[%s861_s7 + $0x8] sm:$0xff]  ;;  %s961_s12 = smov (!%p215_p7, %s730_s12), 1 }
  0x39   : > { %227 = vst.msk [vmem:[#allocation3] sm:$0xff] %vm222_vm0, %v744_v0  ;;  %228 = vst.msk [vmem:[#allocation3 + $0x8] sm:$0xff] %vm222_vm0, %v744_v0  ;;  %v245_v30 = vld [vmem:[%s861_s7 + $0x10] sm:$0xff]  ;;  %v263_v32 = vmul.f32 %v243_v24, %v239_v2  ;;  %v264_v33 = vmul.f32 %v244_v26, %v240_v13  ;;  %v246_v36 = vld [vmem:[%s861_s7 + $0x18] sm:$0xff]  ;;  %s217_s8 = scalar_lea.vmem %s948_s2, %s961_s12 }
  0x3a   : > { %229 = vst.msk [vmem:[#allocation3 + $0x10] sm:$0xff] %vm222_vm0, %v744_v0  ;;  %230 = vst.msk [vmem:[#allocation3 + $0x18] sm:$0xff] %vm222_vm0, %v744_v0  ;;  %v265_v39 = vmul.f32 %v245_v30, %v241_v1  ;;  %v266_v44 = vmul.f32 %v246_v36, %v242_v3 }
  0x3b   : > { %231 = vst.msk [vmem:[#allocation4] sm:$0xff] %vm222_vm0, %v744_v0  ;;  %232 = vst.msk [vmem:[#allocation4 + $0x8] sm:$0xff] %vm222_vm0, %v744_v0 }
  0x3c   : > { %233 = vst.msk [vmem:[#allocation4 + $0x10] sm:$0xff] %vm222_vm0, %v744_v0  ;;  %234 = vst.msk [vmem:[#allocation4 + $0x18] sm:$0xff] %vm222_vm0, %v744_v0 }
  0x3d   : > { %235 = vst.msk [vmem:[#allocation5] sm:$0xff] %vm222_vm0, %v744_v0  ;;  %236 = vst.msk [vmem:[#allocation5 + $0x8] sm:$0xff] %vm222_vm0, %v744_v0 }
  0x3e   : > { %237 = vst.msk [vmem:[#allocation5 + $0x10] sm:$0xff] %vm222_vm0, %v744_v0  ;;  %238 = vst.msk [vmem:[#allocation5 + $0x18] sm:$0xff] %vm222_vm0, %v744_v0  ;;  %v273_v4 = vld [vmem:[#allocation2 + $0x10] sm:$0xff]  ;;  %v271_v5 = vld [vmem:[#allocation2] sm:$0xff] }
  0x3f   : > { %v274_v6 = vld [vmem:[#allocation2 + $0x18] sm:$0xff]  ;;  %v277_v10 = vadd.f32 %v273_v4, %v241_v1  ;;  %v275_v11 = vadd.f32 %v271_v5, %v239_v2  ;;  %v272_v14 = vld [vmem:[#allocation2 + $0x8] sm:$0xff] }
  0x40   : > { %v278_v12 = vadd.f32 %v274_v6, %v242_v3  ;;  %v285_v15 = vld [vmem:[#allocation3 + $0x8] sm:$0xff]  ;;  %v276_v16 = vadd.f32 %v272_v14, %v240_v13  ;;  %v284_v18 = vld [vmem:[#allocation3] sm:$0xff] }
  0x41   : > { %v286_v19 = vld [vmem:[#allocation3 + $0x10] sm:$0xff]  ;;  %v287_v20 = vld [vmem:[#allocation3 + $0x18] sm:$0xff]  ;;  %282 = vst.msk [vmem:[#allocation2 + $0x10] sm:$0xff] %vm222_vm0, %v277_v10  ;;  %280 = vst.msk [vmem:[#allocation2] sm:$0xff] %vm222_vm0, %v275_v11  ;;  %v288_v21 = vadd.f32 %v284_v18, %v251_v7  ;;  %v289_v27 = vadd.f32 %v285_v15, %v252_v17 }
  0x42   : > { %283 = vst.msk [vmem:[#allocation2 + $0x18] sm:$0xff] %vm222_vm0, %v278_v12  ;;  %v290_v22 = vadd.f32 %v286_v19, %v253_v8  ;;  %v291_v23 = vadd.f32 %v287_v20, %v254_v9  ;;  %v296_v25 = vld [vmem:[#allocation4] sm:$0xff]  ;;  %281 = vst.msk [vmem:[#allocation2 + $0x8] sm:$0xff] %vm222_vm0, %v276_v16  ;;  %v297_v29 = vld [vmem:[#allocation4 + $0x8] sm:$0xff] }
  0x43   : > { %v300_v28 = vadd.f32 %v296_v25, %v243_v24  ;;  %v298_v31 = vld [vmem:[#allocation4 + $0x10] sm:$0xff]  ;;  %292 = vst.msk [vmem:[#allocation3] sm:$0xff] %vm222_vm0, %v288_v21  ;;  %v301_v34 = vadd.f32 %v297_v29, %v244_v26  ;;  %v299_v37 = vld [vmem:[#allocation4 + $0x18] sm:$0xff]  ;;  %293 = vst.msk [vmem:[#allocation3 + $0x8] sm:$0xff] %vm222_vm0, %v289_v27 }
  0x44   : > { %294 = vst.msk [vmem:[#allocation3 + $0x10] sm:$0xff] %vm222_vm0, %v290_v22  ;;  %295 = vst.msk [vmem:[#allocation3 + $0x18] sm:$0xff] %vm222_vm0, %v291_v23  ;;  %v302_v35 = vadd.f32 %v298_v31, %v245_v30  ;;  %v308_v38 = vld [vmem:[#allocation5] sm:$0xff]  ;;  %v303_v40 = vadd.f32 %v299_v37, %v246_v36  ;;  %v309_v42 = vld [vmem:[#allocation5 + $0x8] sm:$0xff] }
  0x45   : > { %304 = vst.msk [vmem:[#allocation4] sm:$0xff] %vm222_vm0, %v300_v28  ;;  %v312_v41 = vadd.f32 %v308_v38, %v263_v32  ;;  %v310_v43 = vld [vmem:[#allocation5 + $0x10] sm:$0xff]  ;;  %v311_v45 = vld [vmem:[#allocation5 + $0x18] sm:$0xff]  ;;  %305 = vst.msk [vmem:[#allocation4 + $0x8] sm:$0xff] %vm222_vm0, %v301_v34  ;;  %v313_v46 = vadd.f32 %v309_v42, %v264_v33 }
  0x46   : > { %306 = vst.msk [vmem:[#allocation4 + $0x10] sm:$0xff] %vm222_vm0, %v302_v35  ;;  %v314_v47 = vadd.f32 %v310_v43, %v265_v39  ;;  %307 = vst.msk [vmem:[#allocation4 + $0x18] sm:$0xff] %vm222_vm0, %v303_v40  ;;  %v315_v48 = vadd.f32 %v311_v45, %v266_v44 }
  0x47   : > { %316 = vst.msk [vmem:[#allocation5] sm:$0xff] %vm222_vm0, %v312_v41  ;;  %317 = vst.msk [vmem:[#allocation5 + $0x8] sm:$0xff] %vm222_vm0, %v313_v46 }
  0x48   : > { %318 = vst.msk [vmem:[#allocation5 + $0x10] sm:$0xff] %vm222_vm0, %v314_v47  ;;  %v325_v49 = vld [vmem:[#allocation2 + $0x10] sm:$0xff]  ;;  %v323_v50 = vld [vmem:[#allocation2] sm:$0xff]  ;;  %319 = vst.msk [vmem:[#allocation5 + $0x18] sm:$0xff] %vm222_vm0, %v315_v48 }
  0x49   : > { %v326_v51 = vld [vmem:[#allocation2 + $0x18] sm:$0xff]  ;;  %v333_v52 = vsel %vm222_vm0, %v325_v49, 0.0  ;;  %v327_v53 = vsel %vm222_vm0, %v323_v50, 0.0  ;;  %v324_v54 = vld [vmem:[#allocation2 + $0x8] sm:$0xff] }
  0x4a   : > { %334 = vadd.xlane.f32.xlu1 %v333_v52  ;;  %328 = vadd.xlane.f32.xlu0 %v327_v53  ;;  %v336_v55 = vsel %vm222_vm0, %v326_v51, 0.0  ;;  %v330_v56 = vsel %vm222_vm0, %v324_v54, 0.0  ;;  %v349_v57 = vld [vmem:[#allocation3 + $0x8] sm:$0xff]  ;;  %v348_v58 = vld [vmem:[#allocation3] sm:$0xff] }
  0x4b   : > { %v355_v59 = vsel %vm222_vm0, %v349_v57, 0.0  ;;  %v352_v60 = vsel %vm222_vm0, %v348_v58, 0.0  ;;  %v350_v61 = vld [vmem:[#allocation3 + $0x10] sm:$0xff]  ;;  %v351_v62 = vld [vmem:[#allocation3 + $0x18] sm:$0xff] }
  0x4c   : > { %v358_v63 = vsel %vm222_vm0, %v350_v61, 0.0  ;;  %v361_v0 = vsel %vm222_vm0, %v351_v62, 0.0  ;;  %v373_v1 = vld [vmem:[#allocation4] sm:$0xff]  ;;  %v374_v2 = vld [vmem:[#allocation4 + $0x8] sm:$0xff] }
  0x4d   : > { %v377_v3 = vsel %vm222_vm0, %v373_v1, 0.0  ;;  %v380_v4 = vsel %vm222_vm0, %v374_v2, 0.0  ;;  %v375_v5 = vld [vmem:[#allocation4 + $0x10] sm:$0xff]  ;;  %v376_v6 = vld [vmem:[#allocation4 + $0x18] sm:$0xff] }
  0x4e   : > { %337 = vadd.xlane.f32.xlu1 %v336_v55  ;;  %331 = vadd.xlane.f32.xlu0 %v330_v56  ;;  %v383_v7 = vsel %vm222_vm0, %v375_v5, 0.0  ;;  %v386_v8 = vsel %vm222_vm0, %v376_v6, 0.0  ;;  %v398_v9 = vld [vmem:[#allocation5] sm:$0xff]  ;;  %v399_v10 = vld [vmem:[#allocation5 + $0x8] sm:$0xff] }
  0x4f   : > { %v402_v11 = vsel %vm222_vm0, %v398_v9, 0.0  ;;  %v405_v12 = vsel %vm222_vm0, %v399_v10, 0.0  ;;  %v400_v13 = vld [vmem:[#allocation5 + $0x10] sm:$0xff]  ;;  %v401_v14 = vld [vmem:[#allocation5 + $0x18] sm:$0xff] }
  0x50   : > { %v408_v15 = vsel %vm222_vm0, %v400_v13, 0.0  ;;  %v411_v16 = vsel %vm222_vm0, %v401_v14, 0.0 }
  0x52   : > { %356 = vadd.xlane.f32.xlu1 %v355_v59  ;;  %353 = vadd.xlane.f32.xlu0 %v352_v60 }
  0x56   : > { %359 = vadd.xlane.f32.xlu0 %v358_v63  ;;  %362 = vadd.xlane.f32.xlu1 %v361_v0 }
  0x5a   : > { %378 = vadd.xlane.f32.xlu0 %v377_v3  ;;  %381 = vadd.xlane.f32.xlu1 %v380_v4 }
  0x5e   : > { %384 = vadd.xlane.f32.xlu0 %v383_v7  ;;  %387 = vadd.xlane.f32.xlu1 %v386_v8 }
  0x62   : > { %403 = vadd.xlane.f32.xlu0 %v402_v11  ;;  %406 = vadd.xlane.f32.xlu1 %v405_v12 }
  0x66   : > { %409 = vadd.xlane.f32.xlu0 %v408_v15  ;;  %412 = vadd.xlane.f32.xlu1 %v411_v16 }
  0xd3   : > { %v335_v17 = vpop.xlane.xlu1 %334  ;;  %v329_v18 = vpop.xlane.xlu0 %328 }
  0xd7   : > { %v338_v19 = vpop.xlane.xlu1 %337  ;;  %v332_v20 = vpop.xlane.xlu0 %331 }
  0xd8   : > { %v339_v21 = vadd.f32 %v332_v20, %v329_v18 }
  0xda   : > { %v340_v22 = vadd.f32 %v339_v21, %v335_v17 }
  0xdb   : > { %v357_v23 = vpop.xlane.xlu1 %356  ;;  %v354_v24 = vpop.xlane.xlu0 %353 }
  0xdc   : > { %v341_v25 = vadd.f32 %v340_v22, %v338_v19  ;;  %v364_v27 = vadd.f32 %v357_v23, %v354_v24 }
  0xde   : > { %v342_v26 = vrot.slane %v341_v25, 4 }
  0xdf   : > { %v360_v28 = vpop.xlane.xlu0 %359  ;;  %v363_v29 = vpop.xlane.xlu1 %362 }
  0xe0   : > { %v343_v30 = vadd.f32 %v342_v26, %v341_v25  ;;  %v365_v31 = vadd.f32 %v364_v27, %v360_v28 }
  0xe2   : > { %v344_v32 = vrot.slane %v343_v30, 2  ;;  %v366_v33 = vadd.f32 %v365_v31, %v363_v29 }
  0xe3   : > { %v379_v34 = vpop.xlane.xlu0 %378  ;;  %v382_v35 = vpop.xlane.xlu1 %381 }
  0xe4   : > { %v345_v36 = vadd.f32 %v344_v32, %v343_v30  ;;  %v367_v37 = vrot.slane %v366_v33, 4  ;;  %v389_v46 = vadd.f32 %v382_v35, %v379_v34 }
  0xe6   : > { %v346_v38 = vrot.slane %v345_v36, 1  ;;  %v368_v39 = vadd.f32 %v367_v37, %v366_v33 }
  0xe7   : > { %v385_v40 = vpop.xlane.xlu0 %384  ;;  %v388_v43 = vpop.xlane.xlu1 %387 }
  0xe8   : > { %v347_v41 = vadd.f32 %v346_v38, %v345_v36  ;;  %v369_v42 = vrot.slane %v368_v39, 2  ;;  %v390_v52 = vadd.f32 %v389_v46, %v385_v40 }
  0xea   : > { %v424_v44 = vmul.f32 0.0009765625, %v347_v41  ;;  %v370_v45 = vadd.f32 %v369_v42, %v368_v39  ;;  %v391_v56 = vadd.f32 %v390_v52, %v388_v43 }
  0xeb   : > { %v404_v49 = vpop.xlane.xlu0 %403  ;;  %v407_v53 = vpop.xlane.xlu1 %406 }
  0xec   : > { %v371_v47 = vrot.slane %v370_v45, 1  ;;  %v425_v48 = vmul.f32 1024.0, %v424_v44  ;;  %v414_v57 = vadd.f32 %v407_v53, %v404_v49  ;;  %v392_v60 = vrot.slane %v391_v56, 4 }
  0xee   : > { %v372_v50 = vadd.f32 %v371_v47, %v370_v45  ;;  %v426_v51 = vmul.f32 %v425_v48, %v424_v44  ;;  %v393_v63 = vadd.f32 %v392_v60, %v391_v56 }
  0xef   : > { %v410_v58 = vpop.xlane.xlu0 %409  ;;  %v413_v62 = vpop.xlane.xlu1 %412 }
  0xf0   : > { %v427_v54 = vsub.f32 %v372_v50, %v426_v51  ;;  %v415_v61 = vadd.f32 %v414_v57, %v410_v58  ;;  %v394_v1 = vrot.slane %v393_v63, 2 }
  0xf2   : > { %v428_v55 = vmax.f32 %v427_v54, 0.0  ;;  %v416_v0 = vadd.f32 %v415_v61, %v413_v62  ;;  %v395_v3 = vadd.f32 %v394_v1, %v393_v63 }
  0xf4   : > { %v430_v59 = vmul.f32 0.0009775171, %v428_v55  ;;  %v417_v2 = vrot.slane %v416_v0, 4  ;;  %v396_v8 = vrot.slane %v395_v3, 1 }
  0xf6   : > { %622 = vrsqrt.f32 %v430_v59  ;;  %v418_v4 = vadd.f32 %v417_v2, %v416_v0  ;;  %vm433_vm1 = vcmp.eq.f32.partialorder %v430_v59, inf  ;;  %v436_v7 = vand.u32 2147483648, %v430_v59 }
  0xf7   : > { %vm435_vm2 = vcmp.eq.f32.partialorder %v430_v59, 0.0  ;;  %v397_v13 = vadd.f32 %v396_v8, %v395_v3 }
  0xf8   : > { %v419_v9 = vrot.slane %v418_v4, 2 }
  0xf9   : > { %v438_v17 = vmul.f32 %v424_v44, %v397_v13 }
  0xfa   : > { %v420_v14 = vadd.f32 %v419_v9, %v418_v4 }
  0xfc   : > { %v421_v15 = vrot.slane %v420_v14, 1 }
  0xfe   : > { %v422_v16 = vadd.f32 %v421_v15, %v420_v14 }
 0x100   : > { %v439_v18 = vsub.f32 %v422_v16, %v438_v17 }
 0x103   : > { %v623_v5 = vpop.eup %622 }
 0x104   : > { %v432_v6 = vmul.f32 %v623_v5, %v430_v59 }
 0x106   : > { %v434_v10 = vsel %vm433_vm1, %v430_v59, %v432_v6 }
 0x107   : > { %v437_v11 = vsel %vm435_vm2, %v436_v7, %v434_v10 }
 0x108   : > { %v440_v12 = vadd.f32 1e-07, %v437_v11 }
 0x10a   : > { %624 = vrcp.f32 %v440_v12 }
 0x10b   : > { %626 = vrcp.f32 %v397_v13 }
 0x117   : > { %v625_v19 = vpop.eup %624 }
 0x118   : > { %v442_v20 = vmul.f32 %v625_v19, %v439_v18  ;;  %v627_v21 = vpop.eup %626 }
 0x11a   : > { %v444_v22 = vmul.f32 %v627_v21, %v442_v20 }
 0x11c   : > { %v445_v23 = vsub.f32 0.0, %v444_v22 }
 0x11e   : > { %447 = vst.msk [vmem:[%s217_s8] sm:$0x1] %vm446_vm3, %v445_v23 }
 0x11f PF: > { %s18_s14 = sadd.s32 1, %s738_s14   ;;  %s953_s9 = smov %s722_s10 }
 0x120   : > { %p15_p9 = scmp.ge.s32.totalorder %s18_s14, 4   ;;  %s954_s10 = smov %s726_s11 }
 0x121   : > { %s955_s11 = smov %s809_s21  ;;  %s956_s12 = smov %s734_s13 }
 0x122   : > { %s957_s13 = smov %s959_s16  ;;  %17 = sbr.rel (!%p15_p9) target bundleno = 6 (0x6), region = 89 }
 0x127   :  { %465 = vsyncpa [#allocation7], 1 }
 0x128   :  { %467 = vsyncpa [#allocation7 + $0x1], 1 }
 0x129   :  { %468 = vsyncpa [#allocation9], 1 }
 0x12a   :  { %470 = vsyncpa [#allocation9 + $0x1], 1 }

</bundles_post_ra>
